<compile_context>
chip_gen: v7x
topology: tpu7x:2x2x1
jax: 0.10.0
libtpu: 0.0.40
codegen_flags: <defaults>
</compile_context>

<pallas_src>
import functools

import jax
import jax.numpy as jnp
from jax.experimental import pallas as pl
from jax.experimental.pallas import tpu as pltpu


_MAX_HW_TILE = 2048          # lane tile for spatial (two-pass 4-D path)
_MAX_C_TILE_TWO_PASS = 64    # sublane tile for channels (two-pass 4-D path)
_MAX_N_UNROLL = 8            # batch elements blocked per grid step (two-pass)
_TARGET_STEP_BYTES = 2 * 1024 * 1024
_MAX_C_LANES_2D = 2048       # lane tile for channels (2-D path)
_MAX_N_TILE_2D = 256         # sublane tile for batch (2-D path)


def _round_up(x, m):
    return ((x + m - 1) // m) * m


def _vmem_budget_bytes():
    """~70% of per-core VMEM (64 MiB on v7x, 128 MiB on v5e/v6e)."""
    cap = 64 * 1024 * 1024
    try:
        cap = int(pltpu.get_tpu_info().vmem_capacity_bytes)
    except Exception:
        pass
    return int(cap * 0.7)


def _static_loop(n, body, unroll_limit=16):
    """Run body(i) for i in [0, n); unrolled for small static trip counts."""
    if n <= unroll_limit:
        for i in range(n):
            body(i)
    else:
        def wrapped(i, carry):
            body(i)
            return carry
        jax.lax.fori_loop(0, n, wrapped, 0)


# ---------------------------------------------------------------------------
# 4-D path: x viewed as (N, C, HW); per-channel stats over (N, HW).
# ---------------------------------------------------------------------------
def _bn4d_fused_kernel(x_ref, g_ref, b_ref, mm_ref, mv_ref,
                       y_ref, nmm_ref, nmv_ref, s_acc, q_acc, *,
                       eps, momentum, inv_count, n_batch):
    # Whole (N, c_tile, HW) slab is resident: 1 HBM read + 1 HBM write of x.
    s_acc[...] = jnp.zeros_like(s_acc)
    q_acc[...] = jnp.zeros_like(q_acc)

    def accumulate(i):
        xi = x_ref[i].astype(jnp.float32)              # (c_tile, HW)
        s_acc[...] += xi
        q_acc[...] += xi * xi

    _static_loop(n_batch, accumulate)

    total_s = jnp.sum(s_acc[...], axis=1, keepdims=True)   # (c_tile, 1)
    total_q = jnp.sum(q_acc[...], axis=1, keepdims=True)
    mean = total_s * inv_count
    var = jnp.maximum(total_q * inv_count - mean * mean, 0.0)
    rstd = jax.lax.rsqrt(var + eps)
    scale = g_ref[...] * rstd
    shift = b_ref[...] - mean * scale
    nmm_ref[...] = momentum * mm_ref[...] + (1.0 - momentum) * mean
    nmv_ref[...] = momentum * mv_ref[...] + (1.0 - momentum) * var

    def normalize(i):
        xi = x_ref[i].astype(jnp.float32)
        y_ref[i] = (xi * scale + shift).astype(y_ref.dtype)

    _static_loop(n_batch, normalize)


def _bn4d_stats_kernel(x_ref, g_ref, b_ref, mm_ref, mv_ref,
                       scale_ref, shift_ref, nmm_ref, nmv_ref,
                       acc_s, acc_q, *,
                       eps, momentum, inv_count, hw_total, n_total,
                       n_tile, tile_hw, acc_w):
    ni = pl.program_id(1)
    hi = pl.program_id(2)
    c_tile = acc_s.shape[0]
    num_chunks = tile_hw // acc_w                      # static

    @pl.when(jnp.logical_and(ni == 0, hi == 0))
    def _():
        acc_s[...] = jnp.zeros_like(acc_s)
        acc_q[...] = jnp.zeros_like(acc_q)

    def do_accum(mask_lanes, mask_rows):
        # Local (vreg-resident) accumulators; scratch touched once per step.
        s_loc = jnp.zeros((c_tile, acc_w), jnp.float32)
        q_loc = jnp.zeros((c_tile, acc_w), jnp.float32)
        if mask_lanes:
            lane = jax.lax.broadcasted_iota(jnp.int32, (c_tile, acc_w), 1)
            base = hi * tile_hw
        for i in range(n_tile):
            row_ok = None
            if mask_rows:
                row_ok = ni * n_tile + i < n_total
            for j in range(num_chunks):
                chunk = x_ref[i, :, j * acc_w:(j + 1) * acc_w]
                chunk = chunk.astype(jnp.float32)
                if mask_lanes:
                    ok = base + j * acc_w + lane < hw_total
                    if mask_rows:
                        ok = jnp.logical_and(ok, row_ok)
                    chunk = jnp.where(ok, chunk, 0.0)
                elif mask_rows:
                    chunk = jnp.where(row_ok, chunk, 0.0)
                s_loc = s_loc + chunk
                q_loc = q_loc + chunk * chunk
        acc_s[...] += jnp.sum(s_loc, axis=1, keepdims=True)
        acc_q[...] += jnp.sum(q_loc, axis=1, keepdims=True)

    need_h = (hw_total % tile_hw) != 0                 # static decisions
    need_n = (n_total % n_tile) != 0
    if not need_h and not need_n:
        do_accum(False, False)
    else:
        conds = []
        if need_h:
            conds.append(hi == pl.num_programs(2) - 1)
        if need_n:
            conds.append(ni == pl.num_programs(1) - 1)
        edge = conds[0]
        for extra in conds[1:]:
            edge = jnp.logical_or(edge, extra)

        @pl.when(jnp.logical_not(edge))
        def _():
            do_accum(False, False)                     # interior: unmasked

        @pl.when(edge)
        def _():
            do_accum(need_h, need_n)                   # edge tiles only

    @pl.when(jnp.logical_and(ni == pl.num_programs(1) - 1,
                             hi == pl.num_programs(2) - 1))
    def _():
        mean = acc_s[...] * inv_count
        var = jnp.maximum(acc_q[...] * inv_count - mean * mean, 0.0)
        rstd = jax.lax.rsqrt(var + eps)
        scale = g_ref[...] * rstd
        shift = b_ref[...] - mean * scale
        scale_ref[...] = scale
        shift_ref[...] = shift
        nmm_ref[...] = momentum * mm_ref[...] + (1.0 - momentum) * mean
        nmv_ref[...] = momentum * mv_ref[...] + (1.0 - momentum) * var


def _bn4d_norm_kernel(x_ref, scale_ref, shift_ref, y_ref):
    x = x_ref[...].astype(jnp.float32)                 # (n_tile, c_tile, hw_t)
    scale = scale_ref[...][None, :, :]                 # (1, c_tile, 1)
    shift = shift_ref[...][None, :, :]
    y_ref[...] = (x * scale + shift).astype(y_ref.dtype)


def _fused4d_c_tile(N, C, HW, x_bytes, y_bytes, budget):
    """Largest channel block whose full (N, HW) slab fits the VMEM budget."""
    def req(ct):
        blk = N * ct * HW
        # x + y double-buffered, two f32 accumulators, f32 working temps.
        return blk * 2 * (x_bytes + y_bytes) + ct * HW * 4 * 4

    if C >= 16:
        ct = min(_round_up(pl.cdiv(C, 2), 8), C)       # >=2 blocks -> megacore
    else:
        ct = C
    while ct > 8 and req(ct) > budget:
        ct = max(8, _round_up(ct // 2, 8))
    return ct if req(ct) <= budget else None


def _batch_norm_train_4d(x, gamma, beta, mm, mv, eps, momentum, *,
                         force_two_pass=False, n_tile=None, hw_tile=None):
    N, C, H, W = x.shape
    HW = H * W
    x3 = x.reshape(N, C, HW)                           # free contiguous reshape

    gamma_c = gamma.reshape(C, 1).astype(jnp.float32)
    beta_c = beta.reshape(C, 1).astype(jnp.float32)
    mm_c = mm.reshape(C, 1).astype(jnp.float32)
    mv_c = mv.reshape(C, 1).astype(jnp.float32)

    inv_count = 1.0 / float(N * HW)
    budget = _vmem_budget_bytes()
    xb = x.dtype.itemsize

    # ------------------ fused single-pass path (1R + 1W of x) ---------------
    ct_fused = None if force_two_pass else _fused4d_c_tile(N, C, HW, xb, xb,
                                                           budget)
    if ct_fused is not None:
        ct = ct_fused
        num_c = pl.cdiv(C, ct)
        x_spec = pl.BlockSpec((N, ct, HW), lambda c: (0, c, 0))
        col_spec = pl.BlockSpec((ct, 1), lambda c: (c, 0))
        kernel = functools.partial(
            _bn4d_fused_kernel, eps=float(eps), momentum=float(momentum),
            inv_count=inv_count, n_batch=N)
        y3, new_mm, new_mv = pl.pallas_call(
            kernel,
            grid=(num_c,),
            in_specs=[x_spec, col_spec, col_spec, col_spec, col_spec],
            out_specs=(x_spec, col_spec, col_spec),
            out_shape=(jax.ShapeDtypeStruct((N, C, HW), x.dtype),
                       jax.ShapeDtypeStruct((C, 1), jnp.float32),
                       jax.ShapeDtypeStruct((C, 1), jnp.float32)),
            scratch_shapes=[pltpu.VMEM((ct, HW), jnp.float32),
                            pltpu.VMEM((ct, HW), jnp.float32)],
            compiler_params=pltpu.CompilerParams(
                dimension_semantics=("parallel",),
                vmem_limit_bytes=budget),
        )(x3, gamma_c, beta_c, mm_c, mv_c)
        return y3.reshape(N, C, H, W), new_mm, new_mv

    # ------------------------ two-pass fallback ------------------------------
    if C <= _MAX_C_TILE_TWO_PASS:
        c_tile = min(_round_up(pl.cdiv(C, 2), 8), C) if C >= 16 else C
    else:
        c_tile = _MAX_C_TILE_TWO_PASS

    if hw_tile is not None:
        tile_hw = int(hw_tile)
    elif HW >= 128:
        tile_hw = min(_round_up(HW, 128), _MAX_HW_TILE)
        if tile_hw > HW:
            tile_hw = (HW // 128) * 128
    else:
        tile_hw = HW
    acc_w = 128 if tile_hw % 128 == 0 else tile_hw

    if n_tile is None:
        step_bytes = c_tile * tile_hw * xb
        n_tile = int(max(1, min(N, _MAX_N_UNROLL,
                                _TARGET_STEP_BYTES // max(step_bytes, 1))))
    else:
        n_tile = int(max(1, min(n_tile, N)))

    num_c = pl.cdiv(C, c_tile)
    num_n = pl.cdiv(N, n_tile)
    num_hw = pl.cdiv(HW, tile_hw)

    x_spec = pl.BlockSpec((n_tile, c_tile, tile_hw), lambda c, n, h: (n, c, h))
    col_spec = pl.BlockSpec((c_tile, 1), lambda c, n, h: (c, 0))

    stats_kernel = functools.partial(
        _bn4d_stats_kernel, eps=float(eps), momentum=float(momentum),
        inv_count=inv_count, hw_total=HW, n_total=N,
        n_tile=n_tile, tile_hw=tile_hw, acc_w=acc_w)

    scale, shift, new_mm, new_mv = pl.pallas_call(
        stats_kernel,
        grid=(num_c, num_n, num_hw),
        in_specs=[x_spec, col_spec, col_spec, col_spec, col_spec],
        out_specs=(col_spec, col_spec, col_spec, col_spec),
        out_shape=tuple(jax.ShapeDtypeStruct((C, 1), jnp.float32)
                        for _ in range(4)),
        scratch_shapes=[pltpu.VMEM((c_tile, 1), jnp.float32),
                        pltpu.VMEM((c_tile, 1), jnp.float32)],
        compiler_params=pltpu.CompilerParams(
            dimension_semantics=("parallel", "arbitrary", "arbitrary"),
            vmem_limit_bytes=budget),
    )(x3, gamma_c, beta_c, mm_c, mv_c)

    y3 = pl.pallas_call(
        _bn4d_norm_kernel,
        grid=(num_c, num_n, num_hw),
        in_specs=[x_spec, col_spec, col_spec],
        out_specs=x_spec,
        out_shape=jax.ShapeDtypeStruct((N, C, HW), x.dtype),
        compiler_params=pltpu.CompilerParams(
            dimension_semantics=("parallel", "parallel", "parallel"),
            vmem_limit_bytes=budget),
    )(x3, scale, shift)

    return y3.reshape(N, C, H, W), new_mm, new_mv


# ---------------------------------------------------------------------------
# 2-D path: x is (N, C); C on lanes, reduce over N.
# ---------------------------------------------------------------------------
def _bn2d_fused_kernel(x_ref, g_ref, b_ref, mm_ref, mv_ref,
                       y_ref, nmm_ref, nmv_ref, *, eps, momentum, inv_count):
    x = x_ref[...].astype(jnp.float32)                 # (N, t_c)
    s = jnp.sum(x, axis=0, keepdims=True)
    q = jnp.sum(x * x, axis=0, keepdims=True)
    mean = s * inv_count
    var = jnp.maximum(q * inv_count - mean * mean, 0.0)
    rstd = jax.lax.rsqrt(var + eps)
    scale = g_ref[...] * rstd
    shift = b_ref[...] - mean * scale
    nmm_ref[...] = momentum * mm_ref[...] + (1.0 - momentum) * mean
    nmv_ref[...] = momentum * mv_ref[...] + (1.0 - momentum) * var
    y_ref[...] = (x * scale + shift).astype(y_ref.dtype)


def _bn2d_stats_kernel(x_ref, g_ref, b_ref, mm_ref, mv_ref,
                       scale_ref, shift_ref, nmm_ref, nmv_ref,
                       acc_s, acc_q, *, eps, momentum, inv_count,
                       n_total, t_n):
    ni = pl.program_id(1)

    @pl.when(ni == 0)
    def _():
        acc_s[...] = jnp.zeros_like(acc_s)
        acc_q[...] = jnp.zeros_like(acc_q)

    def do_accum(mask_rows):
        x = x_ref[...].astype(jnp.float32)             # (t_n, t_c)
        if mask_rows:
            row = jax.lax.broadcasted_iota(jnp.int32, x.shape, 0)
            x = jnp.where(ni * t_n + row < n_total, x, 0.0)
        if t_n % 8 == 0:
            # Keep 8 sublanes; cross-sublane reduce happens only at finalize.
            xr = x.reshape(t_n // 8, 8, x.shape[1])
            acc_s[...] += jnp.sum(xr, axis=0)
            acc_q[...] += jnp.sum(xr * xr, axis=0)
        else:
            acc_s[0:1, :] += jnp.sum(x, axis=0, keepdims=True)
            acc_q[0:1, :] += jnp.sum(x * x, axis=0, keepdims=True)

    if n_total % t_n == 0:                             # static decision
        do_accum(False)
    else:
        last = ni == pl.num_programs(1) - 1

        @pl.when(jnp.logical_not(last))
        def _():
            do_accum(False)

        @pl.when(last)
        def _():
            do_accum(True)

    @pl.when(ni == pl.num_programs(1) - 1)
    def _():
        total_s = jnp.sum(acc_s[...], axis=0, keepdims=True)   # (1, t_c)
        total_q = jnp.sum(acc_q[...], axis=0, keepdims=True)
        mean = total_s * inv_count
        var = jnp.maximum(total_q * inv_count - mean * mean, 0.0)
        rstd = jax.lax.rsqrt(var + eps)
        scale = g_ref[...] * rstd
        shift = b_ref[...] - mean * scale
        scale_ref[...] = scale
        shift_ref[...] = shift
        nmm_ref[...] = momentum * mm_ref[...] + (1.0 - momentum) * mean
        nmv_ref[...] = momentum * mv_ref[...] + (1.0 - momentum) * var


def _bn2d_norm_kernel(x_ref, scale_ref, shift_ref, y_ref):
    x = x_ref[...].astype(jnp.float32)
    y_ref[...] = (x * scale_ref[...] + shift_ref[...]).astype(y_ref.dtype)


def _batch_norm_train_2d(x, gamma, beta, mm, mv, eps, momentum, *,
                         force_two_pass=False, n_tile=None):
    N, C = x.shape
    budget = _vmem_budget_bytes()
    xb = x.dtype.itemsize

    g_r = gamma.reshape(1, C).astype(jnp.float32)
    b_r = beta.reshape(1, C).astype(jnp.float32)
    mm_r = mm.reshape(1, C).astype(jnp.float32)
    mv_r = mv.reshape(1, C).astype(jnp.float32)
    inv_count = 1.0 / float(N)

    t_c = C if C <= _MAX_C_LANES_2D else _MAX_C_LANES_2D
    num_c = pl.cdiv(C, t_c)

    # ------------------ fused single-pass path (1R + 1W of x) ---------------
    fused_req = N * t_c * (2 * xb + 2 * xb) + N * t_c * 4 * 3
    if (not force_two_pass) and fused_req <= budget:
        x_spec = pl.BlockSpec((N, t_c), lambda c: (0, c))
        row_spec = pl.BlockSpec((1, t_c), lambda c: (0, c))
        kernel = functools.partial(
            _bn2d_fused_kernel, eps=float(eps), momentum=float(momentum),
            inv_count=inv_count)
        y, new_mm, new_mv = pl.pallas_call(
            kernel,
            grid=(num_c,),
            in_specs=[x_spec, row_spec, row_spec, row_spec, row_spec],
            out_specs=(x_spec, row_spec, row_spec),
            out_shape=(jax.ShapeDtypeStruct((N, C), x.dtype),
                       jax.ShapeDtypeStruct((1, C), jnp.float32),
                       jax.ShapeDtypeStruct((1, C), jnp.float32)),
            compiler_params=pltpu.CompilerParams(
                dimension_semantics=("parallel",),
                vmem_limit_bytes=budget),
        )(x, g_r, b_r, mm_r, mv_r)
        return y, new_mm, new_mv

    # ------------------------ two-pass fallback ------------------------------
    t_n = int(min(N, _MAX_N_TILE_2D)) if n_tile is None else int(min(n_tile, N))
    num_n = pl.cdiv(N, t_n)

    x_spec = pl.BlockSpec((t_n, t_c), lambda c, n: (n, c))
    row_spec = pl.BlockSpec((1, t_c), lambda c, n: (0, c))

    stats_kernel = functools.partial(
        _bn2d_stats_kernel, eps=float(eps), momentum=float(momentum),
        inv_count=inv_count, n_total=N, t_n=t_n)

    scale, shift, new_mm, new_mv = pl.pallas_call(
        stats_kernel,
        grid=(num_c, num_n),
        in_specs=[x_spec, row_spec, row_spec, row_spec, row_spec],
        out_specs=(row_spec, row_spec, row_spec, row_spec),
        out_shape=tuple(jax.ShapeDtypeStruct((1, C), jnp.float32)
                        for _ in range(4)),
        scratch_shapes=[pltpu.VMEM((8, t_c), jnp.float32),
                        pltpu.VMEM((8, t_c), jnp.float32)],
        compiler_params=pltpu.CompilerParams(
            dimension_semantics=("parallel", "arbitrary"),
            vmem_limit_bytes=budget),
    )(x, g_r, b_r, mm_r, mv_r)

    y = pl.pallas_call(
        _bn2d_norm_kernel,
        grid=(num_c, num_n),
        in_specs=[x_spec, row_spec, row_spec],
        out_specs=x_spec,
        out_shape=jax.ShapeDtypeStruct((N, C), x.dtype),
        compiler_params=pltpu.CompilerParams(
            dimension_semantics=("parallel", "parallel"),
            vmem_limit_bytes=budget),
    )(x, scale, shift)

    return y, new_mm, new_mv


# ---------------------------------------------------------------------------
# Module wrapper (training-mode forward, matches the PyTorch spec).
# ---------------------------------------------------------------------------
class BatchNorm:
    """JAX/Pallas port of the PyTorch BatchNorm module (training forward)."""

    def __init__(self, num_features, num_dims):
        shape = (1, num_features) if num_dims == 2 else (1, num_features, 1, 1)
        self.num_dims = num_dims
        self.num_features = num_features
        self.gamma = jnp.ones(shape, jnp.float32)
        self.beta = jnp.zeros(shape, jnp.float32)
        self.moving_mean = jnp.zeros(shape, jnp.float32)
        self.moving_var = jnp.ones(shape, jnp.float32)

    def __call__(self, x):
        # TODO(synk): inference-mode branch (torch.is_grad_enabled()==False)
        # that normalizes with the moving stats is not implemented here.
        eps, momentum = 1e-5, 0.9
        assert x.ndim in (2, 4), "input must be 2-D or 4-D"
        if x.ndim == 4:
            y, new_mm, new_mv = _batch_norm_train_4d(
                x, self.gamma, self.beta, self.moving_mean, self.moving_var,
                eps, momentum)
        else:
            y, new_mm, new_mv = _batch_norm_train_2d(
                x, self.gamma, self.beta, self.moving_mean, self.moving_var,
                eps, momentum)
        self.moving_mean = new_mm.reshape(self.moving_mean.shape)
        self.moving_var = new_mv.reshape(self.moving_var.shape)
        return y


# ---------------------------------------------------------------------------
# Tests
# ---------------------------------------------------------------------------
def _ref_bn(x, gamma, beta, mm, mv, eps=1e-5, momentum=0.9):
    axes = (0, 2, 3) if x.ndim == 4 else (0,)
    mean = x.mean(axis=axes, keepdims=True)
    var = ((x - mean) ** 2).mean(axis=axes, keepdims=True)
    y = gamma * (x - mean) / jnp.sqrt(var + eps) + beta
    new_mm = momentum * mm + (1.0 - momentum) * mean
    new_mv = momentum * mv + (1.0 - momentum) * var
    return y, new_mm, new_mv


if __name__ == "__main__":
    key = jax.random.PRNGKey(0)
    k1, k2, k3, k4, k5, k6 = jax.random.split(key, 6)

    def _check(got, want, name, atol=2e-4, rtol=2e-4):
        assert jnp.allclose(got, want, atol=atol, rtol=rtol), (
            f"{name}: max abs err {float(jnp.max(jnp.abs(got - want))):.3e}")

    # 1) 4-D fused single-pass path.
    x = jax.random.normal(k1, (2, 4, 16, 16), dtype=jnp.float32)
    bn = BatchNorm(num_features=4, num_dims=4)
    y = jax.block_until_ready(bn(x))
    y_ref, mm_ref, mv_ref = _ref_bn(
        x, jnp.ones((1, 4, 1, 1)), jnp.zeros((1, 4, 1, 1)),
        jnp.zeros((1, 4, 1, 1)), jnp.ones((1, 4, 1, 1)))
    _check(y, y_ref, "4d fused y")
    _check(bn.moving_mean, mm_ref, "4d fused moving_mean")
    _check(bn.moving_var, mv_ref, "4d fused moving_var")

    # 2) 2-D fused path.
    x2 = jax.random.normal(k2, (16, 32), dtype=jnp.float32)
    bn2 = BatchNorm(num_features=32, num_dims=2)
    y2 = jax.block_until_ready(bn2(x2))
    y2_ref, mm2_ref, mv2_ref = _ref_bn(
        x2, jnp.ones((1, 32)), jnp.zeros((1, 32)),
        jnp.zeros((1, 32)), jnp.ones((1, 32)))
    _check(y2, y2_ref, "2d fused y")
    _check(bn2.moving_mean, mm2_ref, "2d fused moving_mean")
    _check(bn2.moving_var, mv2_ref, "2d fused moving_var")

    # 3) 4-D two-pass fallback (forced): ragged HW and N tiles exercise masks.
    x3 = jax.random.normal(k3, (3, 12, 10, 15), dtype=jnp.float32)   # HW = 150
    g3 = 0.5 + jax.random.uniform(k4, (1, 12, 1, 1), dtype=jnp.float32)
    b3 = jax.random.normal(k5, (1, 12, 1, 1), dtype=jnp.float32)
    mm3 = jnp.zeros((1, 12, 1, 1), jnp.float32)
    mv3 = jnp.ones((1, 12, 1, 1), jnp.float32)
    y3, nm3, nv3 = _batch_norm_train_4d(
        x3, g3, b3, mm3, mv3, 1e-5, 0.9,
        force_two_pass=True, n_tile=2, hw_tile=128)
    y3 = jax.block_until_ready(y3)
    y3_ref, nm3_ref, nv3_ref = _ref_bn(x3, g3, b3, mm3, mv3)
    _check(y3, y3_ref, "4d two-pass y")
    _check(nm3.reshape(1, 12, 1, 1), nm3_ref, "4d two-pass moving_mean")
    _check(nv3.reshape(1, 12, 1, 1), nv3_ref, "4d two-pass moving_var")

    # 4) 2-D two-pass fallback (forced), ragged N tiles (t_n % 8 == 0 path).
    x4 = jax.random.normal(k6, (10, 32), dtype=jnp.float32)
    g4 = jnp.ones((1, 32), jnp.float32)
    b4 = jnp.zeros((1, 32), jnp.float32)
    mm4 = jnp.zeros((1, 32), jnp.float32)
    mv4 = jnp.ones((1, 32), jnp.float32)
    y4, nm4, nv4 = _batch_norm_train_2d(
        x4, g4, b4, mm4, mv4, 1e-5, 0.9, force_two_pass=True, n_tile=8)
    y4 = jax.block_until_ready(y4)
    y4_ref, nm4_ref, nv4_ref = _ref_bn(x4, g4, b4, mm4, mv4)
    _check(y4, y4_ref, "2d two-pass y")
    _check(nm4, nm4_ref, "2d two-pass moving_mean")
    _check(nv4, nv4_ref, "2d two-pass moving_var")

    # 5) 2-D two-pass fallback, t_n not a multiple of 8.
    x5 = jax.random.normal(k1, (6, 16), dtype=jnp.float32)
    g5 = jnp.ones((1, 16), jnp.float32)
    b5 = jnp.zeros((1, 16), jnp.float32)
    mm5 = jnp.zeros((1, 16), jnp.float32)
    mv5 = jnp.ones((1, 16), jnp.float32)
    y5, nm5, nv5 = _batch_norm_train_2d(
        x5, g5, b5, mm5, mv5, 1e-5, 0.9, force_two_pass=True, n_tile=6)
    y5 = jax.block_until_ready(y5)
    y5_ref, nm5_ref, nv5_ref = _ref_bn(x5, g5, b5, mm5, mv5)
    _check(y5, y5_ref, "2d two-pass (t_n % 8 != 0) y")
    _check(nm5, nm5_ref, "2d two-pass (t_n % 8 != 0) moving_mean")
    _check(nv5, nv5_ref, "2d two-pass (t_n % 8 != 0) moving_var")

    print("KERNEL_OK")
</pallas_src>

<mosaic_0001>
module attributes {stable_mosaic.version = 11 : i64} {
  func.func @_bn4d_fused_kernel(%arg0: i32, %arg1: memref<2x4x256xf32, #tpu.memory_space<vmem>>, %arg2: memref<4x1xf32, #tpu.memory_space<vmem>>, %arg3: memref<4x1xf32, #tpu.memory_space<vmem>>, %arg4: memref<4x1xf32, #tpu.memory_space<vmem>>, %arg5: memref<4x1xf32, #tpu.memory_space<vmem>>, %arg6: memref<2x4x256xf32, #tpu.memory_space<vmem>>, %arg7: memref<4x1xf32, #tpu.memory_space<vmem>>, %arg8: memref<4x1xf32, #tpu.memory_space<vmem>>, %arg9: memref<4x256xf32, #tpu.memory_space<vmem>>, %arg10: memref<4x256xf32, #tpu.memory_space<vmem>>) attributes {dimension_semantics = [#tpu.dimension_semantics<parallel>], iteration_bounds = array<i64: 1>, scalar_prefetch = 0 : i64, scratch_operands = 2 : i64, tpu.core_type = #tpu.core_type<tc>, window_params = [{transform_indices = @transform_0, window_bounds = array<i64: 2, 4, 256>}, {transform_indices = @transform_1, window_bounds = array<i64: 4, 1>}, {transform_indices = @transform_2, window_bounds = array<i64: 4, 1>}, {transform_indices = @transform_3, window_bounds = array<i64: 4, 1>}, {transform_indices = @transform_4, window_bounds = array<i64: 4, 1>}, {transform_indices = @transform_5, window_bounds = array<i64: 2, 4, 256>}, {transform_indices = @transform_6, window_bounds = array<i64: 4, 1>}, {transform_indices = @transform_7, window_bounds = array<i64: 4, 1>}]} {
    %cst = arith.constant 0.000000e+00 : f32
    %0 = vector.broadcast %cst : f32 to vector<4x256xf32>
    %c0 = arith.constant 0 : index
    %c0_0 = arith.constant 0 : index
    %1 = vector.load %arg9[%c0, %c0_0] : memref<4x256xf32, #tpu.memory_space<vmem>>, vector<4x256xf32>
    tpu.vector_store %arg9[%c0, %c0_0], %0 {strides = array<i32>} : memref<4x256xf32, #tpu.memory_space<vmem>>, vector<4x256xf32>,
    %cst_1 = arith.constant 0.000000e+00 : f32
    %2 = vector.broadcast %cst_1 : f32 to vector<4x256xf32>
    %c0_2 = arith.constant 0 : index
    %c0_3 = arith.constant 0 : index
    %3 = vector.load %arg10[%c0_2, %c0_3] : memref<4x256xf32, #tpu.memory_space<vmem>>, vector<4x256xf32>
    tpu.vector_store %arg10[%c0_2, %c0_3], %2 {strides = array<i32>} : memref<4x256xf32, #tpu.memory_space<vmem>>, vector<4x256xf32>,
    %c0_4 = arith.constant 0 : index
    %c0_5 = arith.constant 0 : index
    %c0_6 = arith.constant 0 : index
    %4 = vector.load %arg1[%c0_4, %c0_5, %c0_6] : memref<2x4x256xf32, #tpu.memory_space<vmem>>, vector<1x4x256xf32>
    %5 = vector.shape_cast %4 : vector<1x4x256xf32> to vector<4x256xf32>
    %c0_7 = arith.constant 0 : index
    %c0_8 = arith.constant 0 : index
    %6 = vector.load %arg9[%c0_7, %c0_8] : memref<4x256xf32, #tpu.memory_space<vmem>>, vector<4x256xf32>
    %7 = arith.addf %6, %5 : vector<4x256xf32>
    %c0_9 = arith.constant 0 : index
    %c0_10 = arith.constant 0 : index
    %8 = vector.load %arg9[%c0_9, %c0_10] : memref<4x256xf32, #tpu.memory_space<vmem>>, vector<4x256xf32>
    tpu.vector_store %arg9[%c0_9, %c0_10], %7 {strides = array<i32>} : memref<4x256xf32, #tpu.memory_space<vmem>>, vector<4x256xf32>,
    %c0_11 = arith.constant 0 : index
    %c0_12 = arith.constant 0 : index
    %9 = vector.load %arg10[%c0_11, %c0_12] : memref<4x256xf32, #tpu.memory_space<vmem>>, vector<4x256xf32>
    %10 = arith.mulf %5, %5 : vector<4x256xf32>
    %11 = arith.addf %9, %10 : vector<4x256xf32>
    %c0_13 = arith.constant 0 : index
    %c0_14 = arith.constant 0 : index
    %12 = vector.load %arg10[%c0_13, %c0_14] : memref<4x256xf32, #tpu.memory_space<vmem>>, vector<4x256xf32>
    tpu.vector_store %arg10[%c0_13, %c0_14], %11 {strides = array<i32>} : memref<4x256xf32, #tpu.memory_space<vmem>>, vector<4x256xf32>,
    %c1 = arith.constant 1 : index
    %c0_15 = arith.constant 0 : index
    %c0_16 = arith.constant 0 : index
    %13 = vector.load %arg1[%c1, %c0_15, %c0_16] : memref<2x4x256xf32, #tpu.memory_space<vmem>>, vector<1x4x256xf32>
    %14 = vector.shape_cast %13 : vector<1x4x256xf32> to vector<4x256xf32>
    %c0_17 = arith.constant 0 : index
    %c0_18 = arith.constant 0 : index
    %15 = vector.load %arg9[%c0_17, %c0_18] : memref<4x256xf32, #tpu.memory_space<vmem>>, vector<4x256xf32>
    %16 = arith.addf %15, %14 : vector<4x256xf32>
    %c0_19 = arith.constant 0 : index
    %c0_20 = arith.constant 0 : index
    %17 = vector.load %arg9[%c0_19, %c0_20] : memref<4x256xf32, #tpu.memory_space<vmem>>, vector<4x256xf32>
    tpu.vector_store %arg9[%c0_19, %c0_20], %16 {strides = array<i32>} : memref<4x256xf32, #tpu.memory_space<vmem>>, vector<4x256xf32>,
    %c0_21 = arith.constant 0 : index
    %c0_22 = arith.constant 0 : index
    %18 = vector.load %arg10[%c0_21, %c0_22] : memref<4x256xf32, #tpu.memory_space<vmem>>, vector<4x256xf32>
    %19 = arith.mulf %14, %14 : vector<4x256xf32>
    %20 = arith.addf %18, %19 : vector<4x256xf32>
    %c0_23 = arith.constant 0 : index
    %c0_24 = arith.constant 0 : index
    %21 = vector.load %arg10[%c0_23, %c0_24] : memref<4x256xf32, #tpu.memory_space<vmem>>, vector<4x256xf32>
    tpu.vector_store %arg10[%c0_23, %c0_24], %20 {strides = array<i32>} : memref<4x256xf32, #tpu.memory_space<vmem>>, vector<4x256xf32>,
    %c0_25 = arith.constant 0 : index
    %c0_26 = arith.constant 0 : index
    %22 = vector.load %arg9[%c0_25, %c0_26] : memref<4x256xf32, #tpu.memory_space<vmem>>, vector<4x256xf32>
    %cst_27 = arith.constant dense<0.000000e+00> : vector<4xf32>
    %23 = vector.multi_reduction <add>, %22, %cst_27 [1] : vector<4x256xf32> to vector<4xf32>
    %24 = vector.shape_cast %23 : vector<4xf32> to vector<4x1xf32>
    %c0_28 = arith.constant 0 : index
    %c0_29 = arith.constant 0 : index
    %25 = vector.load %arg10[%c0_28, %c0_29] : memref<4x256xf32, #tpu.memory_space<vmem>>, vector<4x256xf32>
    %cst_30 = arith.constant dense<0.000000e+00> : vector<4xf32>
    %26 = vector.multi_reduction <add>, %25, %cst_30 [1] : vector<4x256xf32> to vector<4xf32>
    %27 = vector.shape_cast %26 : vector<4xf32> to vector<4x1xf32>
    %cst_31 = arith.constant 0.001953125 : f32
    %28 = vector.broadcast %cst_31 : f32 to vector<4x1xf32>
    %29 = arith.mulf %24, %28 : vector<4x1xf32>
    %cst_32 = arith.constant 0.001953125 : f32
    %30 = vector.broadcast %cst_32 : f32 to vector<4x1xf32>
    %31 = arith.mulf %27, %30 : vector<4x1xf32>
    %32 = arith.mulf %29, %29 : vector<4x1xf32>
    %33 = arith.subf %31, %32 : vector<4x1xf32>
    %cst_33 = arith.constant 0.000000e+00 : f32
    %34 = vector.broadcast %cst_33 : f32 to vector<4x1xf32>
    %35 = arith.maximumf %33, %34 : vector<4x1xf32>
    %cst_34 = arith.constant 9.99999974E-6 : f32
    %36 = vector.broadcast %cst_34 : f32 to vector<4x1xf32>
    %37 = arith.addf %35, %36 : vector<4x1xf32>
    %38 = math.rsqrt %37 : vector<4x1xf32>
    %c0_35 = arith.constant 0 : index
    %c0_36 = arith.constant 0 : index
    %39 = vector.load %arg2[%c0_35, %c0_36] : memref<4x1xf32, #tpu.memory_space<vmem>>, vector<4x1xf32>
    %40 = arith.mulf %39, %38 : vector<4x1xf32>
    %c0_37 = arith.constant 0 : index
    %c0_38 = arith.constant 0 : index
    %41 = vector.load %arg3[%c0_37, %c0_38] : memref<4x1xf32, #tpu.memory_space<vmem>>, vector<4x1xf32>
    %42 = arith.mulf %29, %40 : vector<4x1xf32>
    %43 = arith.subf %41, %42 : vector<4x1xf32>
    %c0_39 = arith.constant 0 : index
    %c0_40 = arith.constant 0 : index
    %44 = vector.load %arg4[%c0_39, %c0_40] : memref<4x1xf32, #tpu.memory_space<vmem>>, vector<4x1xf32>
    %cst_41 = arith.constant 0.899999976 : f32
    %45 = vector.broadcast %cst_41 : f32 to vector<4x1xf32>
    %46 = arith.mulf %45, %44 : vector<4x1xf32>
    %cst_42 = arith.constant 1.000000e-01 : f32
    %47 = vector.broadcast %cst_42 : f32 to vector<4x1xf32>
    %48 = arith.mulf %47, %29 : vector<4x1xf32>
    %49 = arith.addf %46, %48 : vector<4x1xf32>
    %c0_43 = arith.constant 0 : index
    %c0_44 = arith.constant 0 : index
    %50 = vector.load %arg7[%c0_43, %c0_44] : memref<4x1xf32, #tpu.memory_space<vmem>>, vector<4x1xf32>
    tpu.vector_store %arg7[%c0_43, %c0_44], %49 {strides = array<i32>} : memref<4x1xf32, #tpu.memory_space<vmem>>, vector<4x1xf32>,
    %c0_45 = arith.constant 0 : index
    %c0_46 = arith.constant 0 : index
    %51 = vector.load %arg5[%c0_45, %c0_46] : memref<4x1xf32, #tpu.memory_space<vmem>>, vector<4x1xf32>
    %cst_47 = arith.constant 0.899999976 : f32
    %52 = vector.broadcast %cst_47 : f32 to vector<4x1xf32>
    %53 = arith.mulf %52, %51 : vector<4x1xf32>
    %cst_48 = arith.constant 1.000000e-01 : f32
    %54 = vector.broadcast %cst_48 : f32 to vector<4x1xf32>
    %55 = arith.mulf %54, %35 : vector<4x1xf32>
    %56 = arith.addf %53, %55 : vector<4x1xf32>
    %c0_49 = arith.constant 0 : index
    %c0_50 = arith.constant 0 : index
    %57 = vector.load %arg8[%c0_49, %c0_50] : memref<4x1xf32, #tpu.memory_space<vmem>>, vector<4x1xf32>
    tpu.vector_store %arg8[%c0_49, %c0_50], %56 {strides = array<i32>} : memref<4x1xf32, #tpu.memory_space<vmem>>, vector<4x1xf32>,
    %c0_51 = arith.constant 0 : index
    %c0_52 = arith.constant 0 : index
    %c0_53 = arith.constant 0 : index
    %58 = vector.load %arg1[%c0_51, %c0_52, %c0_53] : memref<2x4x256xf32, #tpu.memory_space<vmem>>, vector<1x4x256xf32>
    %59 = vector.shape_cast %58 : vector<1x4x256xf32> to vector<4x256xf32>
    %60 = vector.broadcast %40 : vector<4x1xf32> to vector<4x256xf32>
    %61 = arith.mulf %59, %60 : vector<4x256xf32>
    %62 = vector.broadcast %43 : vector<4x1xf32> to vector<4x256xf32>
    %63 = arith.addf %61, %62 : vector<4x256xf32>
    %c0_54 = arith.constant 0 : index
    %c0_55 = arith.constant 0 : index
    %c0_56 = arith.constant 0 : index
    %64 = vector.load %arg6[%c0_54, %c0_55, %c0_56] : memref<2x4x256xf32, #tpu.memory_space<vmem>>, vector<1x4x256xf32>
    %65 = vector.shape_cast %64 : vector<1x4x256xf32> to vector<4x256xf32>
    %66 = vector.shape_cast %63 : vector<4x256xf32> to vector<1x4x256xf32>
    tpu.vector_store %arg6[%c0_54, %c0_55, %c0_56], %66 {strides = array<i32>} : memref<2x4x256xf32, #tpu.memory_space<vmem>>, vector<1x4x256xf32>,
    %c1_57 = arith.constant 1 : index
    %c0_58 = arith.constant 0 : index
    %c0_59 = arith.constant 0 : index
    %67 = vector.load %arg1[%c1_57, %c0_58, %c0_59] : memref<2x4x256xf32, #tpu.memory_space<vmem>>, vector<1x4x256xf32>
    %68 = vector.shape_cast %67 : vector<1x4x256xf32> to vector<4x256xf32>
    %69 = vector.broadcast %40 : vector<4x1xf32> to vector<4x256xf32>
    %70 = arith.mulf %68, %69 : vector<4x256xf32>
    %71 = vector.broadcast %43 : vector<4x1xf32> to vector<4x256xf32>
    %72 = arith.addf %70, %71 : vector<4x256xf32>
    %c1_60 = arith.constant 1 : index
    %c0_61 = arith.constant 0 : index
    %c0_62 = arith.constant 0 : index
    %73 = vector.load %arg6[%c1_60, %c0_61, %c0_62] : memref<2x4x256xf32, #tpu.memory_space<vmem>>, vector<1x4x256xf32>
    %74 = vector.shape_cast %73 : vector<1x4x256xf32> to vector<4x256xf32>
    %75 = vector.shape_cast %72 : vector<4x256xf32> to vector<1x4x256xf32>
    tpu.vector_store %arg6[%c1_60, %c0_61, %c0_62], %75 {strides = array<i32>} : memref<2x4x256xf32, #tpu.memory_space<vmem>>, vector<1x4x256xf32>,
    return
  }
  func.func @transform_0(%arg0: i32) -> (i32, i32, i32) {
    %c0_i32 = arith.constant 0 : i32
    %c0_i32_0 = arith.constant 0 : i32
    %c0_i32_1 = arith.constant 0 : i32
    return %c0_i32, %arg0, %c0_i32_0 : i32, i32, i32
  }
  func.func @transform_1(%arg0: i32) -> (i32, i32) {
    %c0_i32 = arith.constant 0 : i32
    %c0_i32_0 = arith.constant 0 : i32
    return %arg0, %c0_i32 : i32, i32
  }
  func.func @transform_2(%arg0: i32) -> (i32, i32) {
    %c0_i32 = arith.constant 0 : i32
    %c0_i32_0 = arith.constant 0 : i32
    return %arg0, %c0_i32 : i32, i32
  }
  func.func @transform_3(%arg0: i32) -> (i32, i32) {
    %c0_i32 = arith.constant 0 : i32
    %c0_i32_0 = arith.constant 0 : i32
    return %arg0, %c0_i32 : i32, i32
  }
  func.func @transform_4(%arg0: i32) -> (i32, i32) {
    %c0_i32 = arith.constant 0 : i32
    %c0_i32_0 = arith.constant 0 : i32
    return %arg0, %c0_i32 : i32, i32
  }
  func.func @transform_5(%arg0: i32) -> (i32, i32, i32) {
    %c0_i32 = arith.constant 0 : i32
    %c0_i32_0 = arith.constant 0 : i32
    %c0_i32_1 = arith.constant 0 : i32
    return %c0_i32, %arg0, %c0_i32_0 : i32, i32, i32
  }
  func.func @transform_6(%arg0: i32) -> (i32, i32) {
    %c0_i32 = arith.constant 0 : i32
    %c0_i32_0 = arith.constant 0 : i32
    return %arg0, %c0_i32 : i32, i32
  }
  func.func @transform_7(%arg0: i32) -> (i32, i32) {
    %c0_i32 = arith.constant 0 : i32
    %c0_i32_0 = arith.constant 0 : i32
    return %arg0, %c0_i32 : i32, i32
  }
}

</mosaic_0001>

<bundles_post_ra>
// kernel: tpu_custom_call.1
= control target key start
LH: loop header
LB: loop body
LE: loop exit
PB: predicated region body
PF: predicated region fallthrough
CT: control target
= control target key end

     0   :  { %vm47_vm0 = vcmask 1043456   ;;  %s258_s0 = inlined_call_operand.vmem [shape: f32[2,4,256], index: 0, kind: input, shape index: {}]   ;;  %s259_s1 = inlined_call_operand.vmem [shape: f32[4,1], index: 1, kind: input, shape index: {}]   ;;  %s260_s2 = inlined_call_operand.vmem [shape: f32[4,1], index: 2, kind: input, shape index: {}]   ;;  %s261_s3 = inlined_call_operand.vmem [shape: f32[4,1], index: 3, kind: input, shape index: {}]   ;;  %s262_s4 = inlined_call_operand.vmem [shape: f32[4,1], index: 4, kind: input, shape index: {}]   ;;  %s263_s5 = inlined_call_operand.hbm [shape: f32[2,4,256], index: 5, kind: output, shape index: {0}]   ;;  %s264_s6 = inlined_call_operand.vmem [shape: f32[4,1], index: 6, kind: output, shape index: {1}]   ;;  %s265_s7 = inlined_call_operand.vmem [shape: f32[4,1], index: 7, kind: output, shape index: {2}]  }
   0x1   :  { %v26_v0 = vld [vmem:[%s258_s0] sm:$0xff]  ;;  %v142_v1 = vld [vmem:[%s258_s0 + $0x8] sm:$0xff] }
   0x2   :  { %v37_v2 = vadd.f32 %v142_v1, %v26_v0  ;;  %v40_v3 = vmul.f32 %v142_v1, %v142_v1  ;;  %v31_v4 = vmul.f32 %v26_v0, %v26_v0 }
   0x3   :  { %13 = vsyncpa [#allocation5], 0  ;;  %v177_v14 = vmov 0   ;;  %v74_v15 = vld [vmem:[%s261_s3] sm:$0xf]  ;;  %vm78_vm1 = vcmask 3072   ;;  %v93_v39 = vlaneseq }
   0x4   :  { %v45_v5 = vcombine.high %v37_v2, %v37_v2  ;;  %v48_v6 = vsel %vm47_vm0, %v37_v2, 0.0  ;;  %v41_v7 = vadd.f32 %v40_v3, %v31_v4  ;;  %149 = vset.pattern.permute.xlu1 %v177_v14  ;;  %150 = vset.pattern.permute.xlu0 %v177_v14  ;;  %v75_v17 = vmul.f32 0.9, %v74_v15  ;;  %v80_v24 = vld [vmem:[%s262_s4] sm:$0xf] }
   0x5   :  { %v81_v26 = vmul.f32 0.9, %v80_v24  ;;  %v69_v31 = vld [vmem:[%s259_s1] sm:$0xf]  ;;  %v178_v37 = vmov 839922192  }
   0x6   :  { %v49_v8 = vsel %vm47_vm0, %v45_v5, 0.0  ;;  %v55_v9 = vcombine.high %v41_v7, %v41_v7  ;;  %v57_v10 = vsel %vm47_vm0, %v41_v7, 0.0  ;;  %v71_v34 = vld [vmem:[%s260_s2] sm:$0xf]  ;;  %v91_v38 = vunpack.c.l.s4 %v178_v37 }
   0x7   :  { %v50_v11 = vadd.f32 %v49_v8, %v48_v6  ;;  %v94_v41 = vshrl.u32 %v93_v39, 7 }
   0x8   :  { %v58_v12 = vsel %vm47_vm0, %v55_v9, 0.0  ;;  %v92_v40 = vunpack.c.0.s8 %v91_v38 }
   0x9   :  { %51 = vadd.xlane.f32.xlu0 %v50_v11  ;;  %v59_v13 = vadd.f32 %v58_v12, %v57_v10 }
   0xa   :  { %v95_v42 = vsub.s32 %v92_v40, %v94_v41 }
   0xd   :  { %60 = vadd.xlane.f32.xlu0 %v59_v13 }
  0x96   :  { %v52_v16 = vpop.xlane.xlu0 %51 }
  0x97   :  { %v62_v18 = vmul.f32 0.001953125, %v52_v16 }
  0x99   :  { %v76_v19 = vmul.f32 0.1, %v62_v18  ;;  %v64_v22 = vmul.f32 %v62_v18, %v62_v18 }
  0x9a   :  { %v61_v20 = vpop.xlane.xlu0 %60 }
  0x9b   :  { %v77_v21 = vadd.f32 %v76_v19, %v75_v17  ;;  %v63_v23 = vmul.f32 0.001953125, %v61_v20 }
  0x9d   :  { %79 = vst.msk [vmem:[%s264_s6] sm:$0xf] %vm78_vm1, %v77_v21  ;;  %v65_v25 = vsub.f32 %v63_v23, %v64_v22  ;;  %s179_s6 = smov [#allocation4]  }
  0x9e   :  { %s123_s1 = sshll.u32 %s179_s6, 4  ;;  %s124_s1 = int_to_ptr.vmem [resolvable:$true] %s123_s1 }
  0x9f   :  { %v66_v27 = vmax.f32 %v65_v25, 0.0  ;;  %s153_s2 = scalar_lea.vmem %s124_s1, 256  ;;  %p158_p1 = scmp.lt.s32.totalorder %s124_s1, %s124_s1 }
  0xa0   :  { %p154_p0 = scmp.ne.s32.totalorder %s124_s1, %s153_s2  ;;  %p159_p2 = scmp.lt.s32.totalorder %s153_s2, %s153_s2 }
  0xa1   :  { %v67_v28 = vadd.f32 1e-05, %v66_v27  ;;  %v82_v29 = vmul.f32 0.1, %v66_v27 }
  0xa2   :  { %p160_p3 = por %p159_p2, %p158_p1 }
  0xa3   :  { %151 = vrsqrt.f32 %v67_v28  ;;  %v83_v30 = vadd.f32 %v82_v29, %v81_v26 }
  0xa4   :  { %p161_p4 = pnand %p160_p3, %p154_p0 }
  0xa5   :  { %84 = vst.msk [vmem:[%s265_s7] sm:$0xf] %vm78_vm1, %v83_v30 }
  0xad   :  { %v152_v32 = vpop.eup %151 }
  0xae   :  { %v70_v33 = vmul.f32 %v152_v32, %v69_v31 }
  0xb0   :  { %88 = vperm.xlu1 %149, %v70_v33   ;;  %v72_v35 = vmul.f32 %v70_v33, %v62_v18 }
  0xb2   :  { %v73_v36 = vsub.f32 %v71_v34, %v72_v35 }
  0xb4   :  { %101 = vperm.xlu1 %149, %v73_v36  }
 0x12f   :  { %v89_v43 = vpop.permute.xlu1 %88 }
 0x130   :  { %v96_v44 = vrot.slane %v89_v43, %v95_v42 }
 0x132   :  { %v98_v46 = vmul.f32 %v96_v44, %v26_v0  ;;  %v114_v47 = vmul.f32 %v142_v1, %v96_v44 }
 0x133   :  { %v102_v45 = vpop.permute.xlu1 %101 }
 0x134   :  { %v109_v48 = vrot.slane %v102_v45, %v95_v42 }
 0x136   :  { %v111_v49 = vadd.f32 %v109_v48, %v98_v46  ;;  %v115_v50 = vadd.f32 %v114_v47, %v109_v48 }
 0x138   :  { %112 = vst [vmem:[#allocation4] sm:$0xff] %v111_v49  ;;  %117 = vst [vmem:[#allocation4 + $0x8] sm:$0xff] %v115_v50 }
 0x139   :  { %164 = shalt.err (!%p161_p4)
}
 0x13a   :  { %s165_s15 = scalar_lea.hbm %s263_s5, 256 }
 0x13b   :  { %p166_p5 = scmp.ne.s32.totalorder %s263_s5, %s165_s15  ;;  %p169_p6 = scmp.lt.u32.totalorder %s165_s15, %s263_s5 }
 0x13d   :  { %p171_p7 = pnand %p169_p6, %p166_p5 }
 0x13f   :  { %174 = shalt.err (!%p171_p7)
}
 0x140   :  { %s180_s20 = smov 128   ;;  %s181_s21 = smov 8  }
 0x141   :  { %129 = dma.vmem_to_hbm [thread:$0]  %s124_s1, 256, %s263_s5, [#allocation5], %s180_s20, %s180_s20, %s181_s21  }
 0x142   :  { %175 = dma.done.wait [#allocation5], 256  }
 0x143   :  { %176 = vsyncadd [#allocation5], 4294967040 }
 0x144   :  { %141 = vsyncpa [#allocation5], 1 }

</bundles_post_ra>
